<compile_context>
chip_gen: v7x
topology: tpu7x:2x2x1
jax: 0.10.0
libtpu: 0.0.40
codegen_flags: <defaults>
</compile_context>

<pallas_src>
import jax
import jax.numpy as jnp
from jax.experimental import pallas as pl
from jax.experimental.pallas import tpu as pltpu


def _ru(x, m):
    return ((x + m - 1) // m) * m


# ---------------- Fused Pallas kernel ----------------

def _make_decoder_kernel(BP, EP, HP, VEP, DMAX, n_layers):
    """Returns the fused kernel closed over static padded dims."""

    def kernel(tok_ref,                       # (BP, 1) int32 token ids (VMEM)
               emb_ref,                       # (VEP, EP) embedding table
               h_in_ref, c_in_ref,            # (BP, HP)   this layer's h/c
               w_ref,                         # (DMAX+HP, 4HP) stacked [w_ih_t; w_hh_t]
               b_ref,                         # (1, 4HP)   b_ih + b_hh (gate-padded)
               wout_ref, bout_ref,            # (HP, VP), (1, VP)
               h_out_ref, c_out_ref,          # (BP, HP) outputs for this layer
               pred_ref,                      # (BP, VP) logits (written on last layer)
               xh_ref):                       # VMEM scratch (BP, DMAX+HP): [x | h]
        l = pl.program_id(0)

        # --- layer 0: one-hot MXU gather of the embeddings into the x-part ---
        @pl.when(l == 0)
        def _():
            vocab_ids = jax.lax.broadcasted_iota(jnp.int32, (BP, VEP), 1)
            one_hot = (vocab_ids == tok_ref[...]).astype(jnp.float32)      # (BP, VEP)
            x = jnp.dot(one_hot, emb_ref[...],
                        preferred_element_type=jnp.float32)                # (BP, EP)
            xh_ref[:, 0:EP] = x
            if DMAX > EP:   # static
                xh_ref[:, EP:DMAX] = jnp.zeros((BP, DMAX - EP), jnp.float32)
            # dropout(embedded) == identity (eval mode)

        # this layer's hidden state into the h-part of [x | h]
        xh_ref[:, DMAX:DMAX + HP] = h_in_ref[...]

        # --- single merged MXU matmul for all four gates ---
        gates = (jnp.dot(xh_ref[...], w_ref[...],
                         preferred_element_type=jnp.float32)
                 + b_ref[...])                                             # (BP, 4HP)

        # gate boundaries are 128-lane aligned (HP is a multiple of 128)
        i_g = jax.nn.sigmoid(gates[:, 0 * HP:1 * HP])
        f_g = jax.nn.sigmoid(gates[:, 1 * HP:2 * HP])
        g_g = jnp.tanh(gates[:, 2 * HP:3 * HP])
        o_g = jax.nn.sigmoid(gates[:, 3 * HP:4 * HP])

        c_new = f_g * c_in_ref[...] + i_g * g_g
        h_new = o_g * jnp.tanh(c_new)

        h_out_ref[...] = h_new
        c_out_ref[...] = c_new

        # --- stage h_new as next layer's x (inter-layer dropout == identity) ---
        @pl.when(l < n_layers - 1)
        def _():
            xh_ref[:, 0:HP] = h_new
            if DMAX > HP:   # static
                xh_ref[:, HP:DMAX] = jnp.zeros((BP, DMAX - HP), jnp.float32)

        # --- output head on the last layer only ---
        @pl.when(l == n_layers - 1)
        def _():
            pred_ref[...] = (jnp.dot(h_new, wout_ref[...],
                                     preferred_element_type=jnp.float32)
                             + bout_ref[...])

    return kernel


# ---------------- Param packing (pad + stack, gate-aligned) ----------------

def _pack_params(params, n_layers, E, H, V):
    EP, HP, VP = _ru(E, 128), _ru(H, 128), _ru(V, 128)
    VEP = _ru(V, 128)                      # lane-dense one-hot contraction dim
    DMAX = max(EP, HP)

    W = jnp.zeros((n_layers, DMAX + HP, 4 * HP), jnp.float32)
    Bst = jnp.zeros((n_layers, 1, 4 * HP), jnp.float32)
    for l in range(n_layers):
        din = E if l == 0 else H
        w_ih = params[f"w_ih_{l}"]                    # (4H, din)  PyTorch layout
        w_hh = params[f"w_hh_{l}"]                    # (4H, H)
        bias = params[f"b_ih_{l}"] + params[f"b_hh_{l}"]
        for g in range(4):                            # gate g lives at [g*HP, g*HP+H)
            W = W.at[l, 0:din, g * HP:g * HP + H].set(w_ih[g * H:(g + 1) * H, :].T)
            W = W.at[l, DMAX:DMAX + H, g * HP:g * HP + H].set(w_hh[g * H:(g + 1) * H, :].T)
            Bst = Bst.at[l, 0, g * HP:g * HP + H].set(bias[g * H:(g + 1) * H])

    emb_p = jnp.zeros((VEP, EP), jnp.float32).at[:V, :E].set(params["embedding"])
    wout_p = jnp.zeros((HP, VP), jnp.float32).at[:H, :V].set(params["w_out"].T)
    bout_p = jnp.zeros((1, VP), jnp.float32).at[0, :V].set(params["b_out"])
    return emb_p, W, Bst, wout_p, bout_p


# ---------------- Decoder forward (single fused pallas_call) ----------------

def decoder_forward(params, tokens, hidden, cell):
    """Mirrors Decoder.forward: prediction (B, V), new hidden/cell (L, B, H)."""
    L, B, H = hidden.shape
    V, E = params["embedding"].shape
    EP, HP, VP = _ru(E, 128), _ru(H, 128), _ru(V, 128)
    VEP = _ru(V, 128)
    BP = _ru(B, 8)
    DMAX = max(EP, HP)

    emb_p, W, Bst, wout_p, bout_p = _pack_params(params, L, E, H, V)

    tok_p = jnp.zeros((BP, 1), jnp.int32).at[:B, 0].set(tokens.astype(jnp.int32))
    h_p = jnp.zeros((L, BP, HP), jnp.float32).at[:, :B, :H].set(hidden)
    c_p = jnp.zeros((L, BP, HP), jnp.float32).at[:, :B, :H].set(cell)

    kernel = _make_decoder_kernel(BP, EP, HP, VEP, DMAX, L)

    grid_spec = pltpu.PrefetchScalarGridSpec(
        num_scalar_prefetch=0,
        grid=(L,),
        in_specs=[
            pl.BlockSpec((BP, 1), lambda l: (0, 0)),                        # token ids
            pl.BlockSpec((VEP, EP), lambda l: (0, 0)),                      # embedding
            pl.BlockSpec((None, BP, HP), lambda l: (l, 0, 0)),              # hidden[l]
            pl.BlockSpec((None, BP, HP), lambda l: (l, 0, 0)),              # cell[l]
            pl.BlockSpec((None, DMAX + HP, 4 * HP), lambda l: (l, 0, 0)),   # W[l]
            pl.BlockSpec((None, 1, 4 * HP), lambda l: (l, 0, 0)),           # bias[l]
            pl.BlockSpec((HP, VP), lambda l: (0, 0)),                       # w_out_t
            pl.BlockSpec((1, VP), lambda l: (0, 0)),                        # b_out
        ],
        out_specs=(
            pl.BlockSpec((None, BP, HP), lambda l: (l, 0, 0)),              # h_new[l]
            pl.BlockSpec((None, BP, HP), lambda l: (l, 0, 0)),              # c_new[l]
            pl.BlockSpec((BP, VP), lambda l: (0, 0)),                       # prediction
        ),
        scratch_shapes=[pltpu.VMEM((BP, DMAX + HP), jnp.float32)],          # [x | h]
    )

    h_new, c_new, pred = pl.pallas_call(
        kernel,
        out_shape=(jax.ShapeDtypeStruct((L, BP, HP), jnp.float32),
                   jax.ShapeDtypeStruct((L, BP, HP), jnp.float32),
                   jax.ShapeDtypeStruct((BP, VP), jnp.float32)),
        grid_spec=grid_spec,
        compiler_params=pltpu.CompilerParams(
            dimension_semantics=("arbitrary",)),   # layer axis is sequential (carry)
    )(tok_p, emb_p, h_p, c_p, W, Bst, wout_p, bout_p)

    # strip padding (padded logits / rows must not leak downstream)
    return pred[:B, :V], h_new[:, :B, :H], c_new[:, :B, :H]


# ---------------- Pure-JAX reference for verification ----------------

def decoder_reference(params, tokens, hidden, cell):
    x = params["embedding"][tokens]            # (B, E)
    L, _, H = hidden.shape
    new_h, new_c = [], []
    for l in range(L):
        h, c = hidden[l], cell[l]
        gates = (x @ params[f"w_ih_{l}"].T + h @ params[f"w_hh_{l}"].T
                 + params[f"b_ih_{l}"] + params[f"b_hh_{l}"])
        i_g = jax.nn.sigmoid(gates[:, 0:H])
        f_g = jax.nn.sigmoid(gates[:, H:2 * H])
        g_g = jnp.tanh(gates[:, 2 * H:3 * H])
        o_g = jax.nn.sigmoid(gates[:, 3 * H:4 * H])
        c_new = f_g * c + i_g * g_g
        h_new = o_g * jnp.tanh(c_new)
        new_h.append(h_new)
        new_c.append(c_new)
        x = h_new
    pred = x @ params["w_out"].T + params["b_out"]
    return pred, jnp.stack(new_h), jnp.stack(new_c)


# ---------------- Setup & run ----------------

def make_params(key, output_dim, emb_dim, hid_dim, n_layers):
    ks = jax.random.split(key, 3 + 4 * n_layers)
    params = {"embedding": 0.1 * jax.random.normal(ks[0], (output_dim, emb_dim), jnp.float32)}
    for l in range(n_layers):
        din = emb_dim if l == 0 else hid_dim
        k0, k1, k2, k3 = ks[3 + 4 * l: 7 + 4 * l]
        params[f"w_ih_{l}"] = 0.1 * jax.random.normal(k0, (4 * hid_dim, din), jnp.float32)
        params[f"w_hh_{l}"] = 0.1 * jax.random.normal(k1, (4 * hid_dim, hid_dim), jnp.float32)
        params[f"b_ih_{l}"] = 0.1 * jax.random.normal(k2, (4 * hid_dim,), jnp.float32)
        params[f"b_hh_{l}"] = 0.1 * jax.random.normal(k3, (4 * hid_dim,), jnp.float32)
    params["w_out"] = 0.1 * jax.random.normal(ks[1], (output_dim, hid_dim), jnp.float32)
    params["b_out"] = 0.1 * jax.random.normal(ks[2], (output_dim,), jnp.float32)
    return params


if __name__ == "__main__":
    OUTPUT_DIM = 50      # vocab size
    EMB_DIM = 32
    HID_DIM = 32
    N_LAYERS = 2
    BATCH = 2

    key = jax.random.PRNGKey(0)
    k_tok, k_h, k_c, k_p = jax.random.split(key, 4)

    tokens = jax.random.randint(k_tok, (BATCH,), 0, OUTPUT_DIM, dtype=jnp.int32)
    hidden = jax.random.normal(k_h, (N_LAYERS, BATCH, HID_DIM), jnp.float32)
    cell = jax.random.normal(k_c, (N_LAYERS, BATCH, HID_DIM), jnp.float32)
    params = make_params(k_p, OUTPUT_DIM, EMB_DIM, HID_DIM, N_LAYERS)

    fwd = jax.jit(decoder_forward)
    pred, h_new, c_new = fwd(params, tokens, hidden, cell)
    jax.block_until_ready((pred, h_new, c_new))

    pred_ref, h_ref, c_ref = decoder_reference(params, tokens, hidden, cell)
    assert pred.shape == (BATCH, OUTPUT_DIM)
    assert h_new.shape == (N_LAYERS, BATCH, HID_DIM)
    assert c_new.shape == (N_LAYERS, BATCH, HID_DIM)
    assert jnp.allclose(pred, pred_ref, atol=1e-4), float(jnp.max(jnp.abs(pred - pred_ref)))
    assert jnp.allclose(h_new, h_ref, atol=1e-4), float(jnp.max(jnp.abs(h_new - h_ref)))
    assert jnp.allclose(c_new, c_ref, atol=1e-4), float(jnp.max(jnp.abs(c_new - c_ref)))

    print("KERNEL_OK")
</pallas_src>

<mosaic_0001>
module attributes {stable_mosaic.version = 11 : i64} {
  func.func @kernel(%arg0: i32, %arg1: memref<8x1xi32, #tpu.memory_space<vmem>>, %arg2: memref<128x128xf32, #tpu.memory_space<vmem>>, %arg3: memref<1x8x128xf32, #tpu.memory_space<vmem>>, %arg4: memref<1x8x128xf32, #tpu.memory_space<vmem>>, %arg5: memref<1x256x512xf32, #tpu.memory_space<vmem>>, %arg6: memref<1x1x512xf32, #tpu.memory_space<vmem>>, %arg7: memref<128x128xf32, #tpu.memory_space<vmem>>, %arg8: memref<1x128xf32, #tpu.memory_space<vmem>>, %arg9: memref<1x8x128xf32, #tpu.memory_space<vmem>>, %arg10: memref<1x8x128xf32, #tpu.memory_space<vmem>>, %arg11: memref<8x128xf32, #tpu.memory_space<vmem>>, %arg12: memref<8x256xf32, #tpu.memory_space<vmem>>) attributes {dimension_semantics = [#tpu.dimension_semantics<arbitrary>], iteration_bounds = array<i64: 2>, scalar_prefetch = 0 : i64, scratch_operands = 1 : i64, tpu.core_type = #tpu.core_type<tc>, window_params = [{pipeline_mode = #tpu.pipeline_mode<synchronous>, transform_indices = @transform_0, window_bounds = array<i64: 8, 1>}, {pipeline_mode = #tpu.pipeline_mode<synchronous>, transform_indices = @transform_1, window_bounds = array<i64: 128, 128>}, {transform_indices = @transform_2, window_bounds = array<i64: 1, 8, 128>}, {transform_indices = @transform_3, window_bounds = array<i64: 1, 8, 128>}, {transform_indices = @transform_4, window_bounds = array<i64: 1, 256, 512>}, {transform_indices = @transform_5, window_bounds = array<i64: 1, 1, 512>}, {pipeline_mode = #tpu.pipeline_mode<synchronous>, transform_indices = @transform_6, window_bounds = array<i64: 128, 128>}, {pipeline_mode = #tpu.pipeline_mode<synchronous>, transform_indices = @transform_7, window_bounds = array<i64: 1, 128>}, {transform_indices = @transform_8, window_bounds = array<i64: 1, 8, 128>}, {transform_indices = @transform_9, window_bounds = array<i64: 1, 8, 128>}, {pipeline_mode = #tpu.pipeline_mode<synchronous>, transform_indices = @transform_10, window_bounds = array<i64: 8, 128>}]} {
    %c0_i32 = arith.constant 0 : i32
    %0 = arith.cmpi eq, %arg0, %c0_i32 : i32
    %1 = arith.extui %0 : i1 to i32
    %c0_i32_0 = arith.constant 0 : i32
    %2 = arith.cmpi ne, %1, %c0_i32_0 : i32
    scf.if %2 {
      %53 = tpu.iota {dimensions = array<i32: 1>} : vector<8x128xi32>
      %c0_27 = arith.constant 0 : index
      %c0_28 = arith.constant 0 : index
      %54 = vector.load %arg1[%c0_27, %c0_28] : memref<8x1xi32, #tpu.memory_space<vmem>>, vector<8x1xi32>
      %55 = vector.broadcast %54 : vector<8x1xi32> to vector<8x128xi32>
      %56 = arith.cmpi eq, %53, %55 : vector<8x128xi32>
      %57 = arith.extui %56 : vector<8x128xi1> to vector<8x128xi32>
      %58 = arith.sitofp %57 : vector<8x128xi32> to vector<8x128xf32>
      %c0_29 = arith.constant 0 : index
      %c0_30 = arith.constant 0 : index
      %59 = vector.load %arg2[%c0_29, %c0_30] : memref<128x128xf32, #tpu.memory_space<vmem>>, vector<128x128xf32>
      %cst_31 = arith.constant dense<0.000000e+00> : vector<8x128xf32>
      %60 = tpu.matmul %58, %59, %cst_31 {dimension_numbers = #tpu.dot_dimension_numbers<[1], [0], [0], [1], [0, 0, 1, 1], [], []>} : vector<8x128xf32>, vector<128x128xf32>, vector<8x128xf32> -> vector<8x128xf32>
      %c0_32 = arith.constant 0 : index
      %c0_33 = arith.constant 0 : index
      %61 = vector.load %arg12[%c0_32, %c0_33] : memref<8x256xf32, #tpu.memory_space<vmem>>, vector<8x128xf32>
      tpu.vector_store %arg12[%c0_32, %c0_33], %60 {strides = array<i32>} : memref<8x256xf32, #tpu.memory_space<vmem>>, vector<8x128xf32>,
    } else {
    }
    %c0 = arith.constant 0 : index
    %c0_1 = arith.constant 0 : index
    %c0_2 = arith.constant 0 : index
    %3 = vector.load %arg3[%c0, %c0_1, %c0_2] : memref<1x8x128xf32, #tpu.memory_space<vmem>>, vector<1x8x128xf32>
    %4 = vector.shape_cast %3 : vector<1x8x128xf32> to vector<8x128xf32>
    %c0_3 = arith.constant 0 : index
    %c128 = arith.constant 128 : index
    %5 = vector.load %arg12[%c0_3, %c128] : memref<8x256xf32, #tpu.memory_space<vmem>>, vector<8x128xf32>
    tpu.vector_store %arg12[%c0_3, %c128], %4 {strides = array<i32>} : memref<8x256xf32, #tpu.memory_space<vmem>>, vector<8x128xf32>,
    %c0_4 = arith.constant 0 : index
    %c0_5 = arith.constant 0 : index
    %6 = vector.load %arg12[%c0_4, %c0_5] : memref<8x256xf32, #tpu.memory_space<vmem>>, vector<8x256xf32>
    %c0_6 = arith.constant 0 : index
    %c0_7 = arith.constant 0 : index
    %c0_8 = arith.constant 0 : index
    %7 = vector.load %arg5[%c0_6, %c0_7, %c0_8] : memref<1x256x512xf32, #tpu.memory_space<vmem>>, vector<1x256x512xf32>
    %8 = vector.shape_cast %7 : vector<1x256x512xf32> to vector<256x512xf32>
    %cst = arith.constant dense<0.000000e+00> : vector<8x512xf32>
    %9 = tpu.matmul %6, %8, %cst {dimension_numbers = #tpu.dot_dimension_numbers<[1], [0], [0], [1], [0, 0, 1, 1], [], []>} : vector<8x256xf32>, vector<256x512xf32>, vector<8x512xf32> -> vector<8x512xf32>
    %c0_9 = arith.constant 0 : index
    %c0_10 = arith.constant 0 : index
    %c0_11 = arith.constant 0 : index
    %10 = vector.load %arg6[%c0_9, %c0_10, %c0_11] : memref<1x1x512xf32, #tpu.memory_space<vmem>>, vector<1x1x512xf32>
    %11 = vector.shape_cast %10 : vector<1x1x512xf32> to vector<1x512xf32>
    %12 = vector.broadcast %11 : vector<1x512xf32> to vector<8x512xf32>
    %13 = arith.addf %9, %12 : vector<8x512xf32>
    %14 = vector.extract_strided_slice %13 {offsets = [0, 0], sizes = [8, 128], strides = [1, 1]} : vector<8x512xf32> to vector<8x128xf32>
    %15 = arith.negf %14 : vector<8x128xf32>
    %16 = math.exp %15 : vector<8x128xf32>
    %cst_12 = arith.constant 1.000000e+00 : f32
    %17 = vector.broadcast %cst_12 : f32 to vector<8x128xf32>
    %18 = arith.addf %17, %16 : vector<8x128xf32>
    %19 = arith.divf %17, %18 : vector<8x128xf32>
    %20 = vector.extract_strided_slice %13 {offsets = [0, 128], sizes = [8, 128], strides = [1, 1]} : vector<8x512xf32> to vector<8x128xf32>
    %21 = arith.negf %20 : vector<8x128xf32>
    %22 = math.exp %21 : vector<8x128xf32>
    %cst_13 = arith.constant 1.000000e+00 : f32
    %23 = vector.broadcast %cst_13 : f32 to vector<8x128xf32>
    %24 = arith.addf %23, %22 : vector<8x128xf32>
    %25 = arith.divf %23, %24 : vector<8x128xf32>
    %26 = vector.extract_strided_slice %13 {offsets = [0, 256], sizes = [8, 128], strides = [1, 1]} : vector<8x512xf32> to vector<8x128xf32>
    %27 = math.tanh %26 : vector<8x128xf32>
    %28 = vector.extract_strided_slice %13 {offsets = [0, 384], sizes = [8, 128], strides = [1, 1]} : vector<8x512xf32> to vector<8x128xf32>
    %29 = arith.negf %28 : vector<8x128xf32>
    %30 = math.exp %29 : vector<8x128xf32>
    %cst_14 = arith.constant 1.000000e+00 : f32
    %31 = vector.broadcast %cst_14 : f32 to vector<8x128xf32>
    %32 = arith.addf %31, %30 : vector<8x128xf32>
    %33 = arith.divf %31, %32 : vector<8x128xf32>
    %c0_15 = arith.constant 0 : index
    %c0_16 = arith.constant 0 : index
    %c0_17 = arith.constant 0 : index
    %34 = vector.load %arg4[%c0_15, %c0_16, %c0_17] : memref<1x8x128xf32, #tpu.memory_space<vmem>>, vector<1x8x128xf32>
    %35 = vector.shape_cast %34 : vector<1x8x128xf32> to vector<8x128xf32>
    %36 = arith.mulf %25, %35 : vector<8x128xf32>
    %37 = arith.mulf %19, %27 : vector<8x128xf32>
    %38 = arith.addf %36, %37 : vector<8x128xf32>
    %39 = math.tanh %38 : vector<8x128xf32>
    %40 = arith.mulf %33, %39 : vector<8x128xf32>
    %c0_18 = arith.constant 0 : index
    %c0_19 = arith.constant 0 : index
    %c0_20 = arith.constant 0 : index
    %41 = vector.load %arg9[%c0_18, %c0_19, %c0_20] : memref<1x8x128xf32, #tpu.memory_space<vmem>>, vector<1x8x128xf32>
    %42 = vector.shape_cast %41 : vector<1x8x128xf32> to vector<8x128xf32>
    %43 = vector.shape_cast %40 : vector<8x128xf32> to vector<1x8x128xf32>
    tpu.vector_store %arg9[%c0_18, %c0_19, %c0_20], %43 {strides = array<i32>} : memref<1x8x128xf32, #tpu.memory_space<vmem>>, vector<1x8x128xf32>,
    %c0_21 = arith.constant 0 : index
    %c0_22 = arith.constant 0 : index
    %c0_23 = arith.constant 0 : index
    %44 = vector.load %arg10[%c0_21, %c0_22, %c0_23] : memref<1x8x128xf32, #tpu.memory_space<vmem>>, vector<1x8x128xf32>
    %45 = vector.shape_cast %44 : vector<1x8x128xf32> to vector<8x128xf32>
    %46 = vector.shape_cast %38 : vector<8x128xf32> to vector<1x8x128xf32>
    tpu.vector_store %arg10[%c0_21, %c0_22, %c0_23], %46 {strides = array<i32>} : memref<1x8x128xf32, #tpu.memory_space<vmem>>, vector<1x8x128xf32>,
    %c1_i32 = arith.constant 1 : i32
    %47 = arith.cmpi slt, %arg0, %c1_i32 : i32
    %48 = arith.extui %47 : i1 to i32
    %c0_i32_24 = arith.constant 0 : i32
    %49 = arith.cmpi ne, %48, %c0_i32_24 : i32
    scf.if %49 {
      %c0_27 = arith.constant 0 : index
      %c0_28 = arith.constant 0 : index
      %53 = vector.load %arg12[%c0_27, %c0_28] : memref<8x256xf32, #tpu.memory_space<vmem>>, vector<8x128xf32>
      tpu.vector_store %arg12[%c0_27, %c0_28], %40 {strides = array<i32>} : memref<8x256xf32, #tpu.memory_space<vmem>>, vector<8x128xf32>,
    } else {
    }
    %c1_i32_25 = arith.constant 1 : i32
    %50 = arith.cmpi eq, %arg0, %c1_i32_25 : i32
    %51 = arith.extui %50 : i1 to i32
    %c0_i32_26 = arith.constant 0 : i32
    %52 = arith.cmpi ne, %51, %c0_i32_26 : i32
    scf.if %52 {
      %c0_27 = arith.constant 0 : index
      %c0_28 = arith.constant 0 : index
      %53 = vector.load %arg7[%c0_27, %c0_28] : memref<128x128xf32, #tpu.memory_space<vmem>>, vector<128x128xf32>
      %cst_29 = arith.constant dense<0.000000e+00> : vector<8x128xf32>
      %54 = tpu.matmul %40, %53, %cst_29 {dimension_numbers = #tpu.dot_dimension_numbers<[1], [0], [0], [1], [0, 0, 1, 1], [], []>} : vector<8x128xf32>, vector<128x128xf32>, vector<8x128xf32> -> vector<8x128xf32>
      %c0_30 = arith.constant 0 : index
      %c0_31 = arith.constant 0 : index
      %55 = vector.load %arg8[%c0_30, %c0_31] : memref<1x128xf32, #tpu.memory_space<vmem>>, vector<1x128xf32>
      %56 = vector.broadcast %55 : vector<1x128xf32> to vector<8x128xf32>
      %57 = arith.addf %54, %56 : vector<8x128xf32>
      %c0_32 = arith.constant 0 : index
      %c0_33 = arith.constant 0 : index
      %58 = vector.load %arg11[%c0_32, %c0_33] : memref<8x128xf32, #tpu.memory_space<vmem>>, vector<8x128xf32>
      tpu.vector_store %arg11[%c0_32, %c0_33], %57 {strides = array<i32>} : memref<8x128xf32, #tpu.memory_space<vmem>>, vector<8x128xf32>,
    } else {
    }
    return
  }
  func.func @transform_0(%arg0: i32) -> (i32, i32) {
    %c0_i32 = arith.constant 0 : i32
    %c0_i32_0 = arith.constant 0 : i32
    %c0_i32_1 = arith.constant 0 : i32
    return %c0_i32, %c0_i32_0 : i32, i32
  }
  func.func @transform_1(%arg0: i32) -> (i32, i32) {
    %c0_i32 = arith.constant 0 : i32
    %c0_i32_0 = arith.constant 0 : i32
    %c0_i32_1 = arith.constant 0 : i32
    return %c0_i32, %c0_i32_0 : i32, i32
  }
  func.func @transform_2(%arg0: i32) -> (i32, i32, i32) {
    %c0_i32 = arith.constant 0 : i32
    %c0_i32_0 = arith.constant 0 : i32
    %c0_i32_1 = arith.constant 0 : i32
    return %arg0, %c0_i32, %c0_i32_0 : i32, i32, i32
  }
  func.func @transform_3(%arg0: i32) -> (i32, i32, i32) {
    %c0_i32 = arith.constant 0 : i32
    %c0_i32_0 = arith.constant 0 : i32
    %c0_i32_1 = arith.constant 0 : i32
    return %arg0, %c0_i32, %c0_i32_0 : i32, i32, i32
  }
  func.func @transform_4(%arg0: i32) -> (i32, i32, i32) {
    %c0_i32 = arith.constant 0 : i32
    %c0_i32_0 = arith.constant 0 : i32
    %c0_i32_1 = arith.constant 0 : i32
    return %arg0, %c0_i32, %c0_i32_0 : i32, i32, i32
  }
  func.func @transform_5(%arg0: i32) -> (i32, i32, i32) {
    %c0_i32 = arith.constant 0 : i32
    %c0_i32_0 = arith.constant 0 : i32
    %c0_i32_1 = arith.constant 0 : i32
    return %arg0, %c0_i32, %c0_i32_0 : i32, i32, i32
  }
  func.func @transform_6(%arg0: i32) -> (i32, i32) {
    %c0_i32 = arith.constant 0 : i32
    %c0_i32_0 = arith.constant 0 : i32
    %c0_i32_1 = arith.constant 0 : i32
    return %c0_i32, %c0_i32_0 : i32, i32
  }
  func.func @transform_7(%arg0: i32) -> (i32, i32) {
    %c0_i32 = arith.constant 0 : i32
    %c0_i32_0 = arith.constant 0 : i32
    %c0_i32_1 = arith.constant 0 : i32
    return %c0_i32, %c0_i32_0 : i32, i32
  }
  func.func @transform_8(%arg0: i32) -> (i32, i32, i32) {
    %c0_i32 = arith.constant 0 : i32
    %c0_i32_0 = arith.constant 0 : i32
    %c0_i32_1 = arith.constant 0 : i32
    return %arg0, %c0_i32, %c0_i32_0 : i32, i32, i32
  }
  func.func @transform_9(%arg0: i32) -> (i32, i32, i32) {
    %c0_i32 = arith.constant 0 : i32
    %c0_i32_0 = arith.constant 0 : i32
    %c0_i32_1 = arith.constant 0 : i32
    return %arg0, %c0_i32, %c0_i32_0 : i32, i32, i32
  }
  func.func @transform_10(%arg0: i32) -> (i32, i32) {
    %c0_i32 = arith.constant 0 : i32
    %c0_i32_0 = arith.constant 0 : i32
    %c0_i32_1 = arith.constant 0 : i32
    return %c0_i32, %c0_i32_0 : i32, i32
  }
}

</mosaic_0001>

<bundles_post_ra>
// kernel: decoder_forward.1
= control target key start
LH: loop header
LB: loop body
LE: loop exit
PB: predicated region body
PF: predicated region fallthrough
CT: control target
= control target key end

     0   :  { %s1477_s13 = smov 0   ;;  %s1777_s0 = inlined_call_operand.vmem [shape: s32[8,1], index: 0, kind: input, shape index: {}]   ;;  %s1778_s1 = inlined_call_operand.vmem [shape: f32[128,128], index: 1, kind: input, shape index: {}]   ;;  %s1779_s2 = inlined_call_operand.vmem [shape: f32[2,8,128], index: 2, kind: input, shape index: {}]   ;;  %s1780_s3 = inlined_call_operand.vmem [shape: f32[2,8,128], index: 3, kind: input, shape index: {}]   ;;  %s1781_s4 = inlined_call_operand.vmem [shape: f32[2,256,512], index: 4, kind: input, shape index: {}]   ;;  %s1782_s5 = inlined_call_operand.vmem [shape: f32[2,1,512], index: 5, kind: input, shape index: {}]   ;;  %s1783_s6 = inlined_call_operand.vmem [shape: f32[128,128], index: 6, kind: input, shape index: {}]   ;;  %s1784_s7 = inlined_call_operand.vmem [shape: f32[1,128], index: 7, kind: input, shape index: {}]   ;;  %s1785_s8 = inlined_call_operand.vmem [shape: f32[2,8,128], index: 8, kind: output, shape index: {0}]   ;;  %s1786_s9 = inlined_call_operand.vmem [shape: f32[2,8,128], index: 9, kind: output, shape index: {1}]   ;;  %s1787_s10 = inlined_call_operand.vmem [shape: f32[8,128], index: 10, kind: output, shape index: {2}]  }
   0x1 LB: > { %s1483_s14 = sadd.s32 4294967295, %s1412_s13   ;;  %p1073_p0 = scmp.ge.s32.totalorder %s1412_s13, 1  ;;  %s1412_s13 = sphi %s1477_s13, %s21_s13  }
   0x2   : > { %p339_p1 = scmp.lt.s32.totalorder %s1412_s13, 3 }
   0x4   : > { %p340_p2 = pnand %p1073_p0, %p339_p1 }
   0x5   : > { %p392_p3 = scmp.lt.s32.totalorder (!%p340_p2), %s1483_s14, 1  ;;  %p1081_p4 = scmp.ne.s32.totalorder (!%p340_p2), %s1483_s14, 0 }
   0x6   : > { %343 = sbr.rel (%p340_p2) target bundleno = 935 (0x3a7), region = 52 }
   0xd   : > { %s393_s15 = scalar_select %p392_p3, %s1483_s14, 1 }
   0xe   : > { %420 = sbr.rel (%p1081_p4) target bundleno = 358 (0x166), region = 56  ;;  %v423_v0 = vld [vmem:[%s1777_s0] sm:$0xff] (!%p1081_p4)  ;;  %v431_v2 = vld [vmem:[%s1778_s1 + $0x8] sm:$0xff] (!%p1081_p4)  ;;  %v1414_v3 = vmov (!%p1081_p4), 0   ;;  %v1415_v4 = vmov (!%p1081_p4), 0.0|0.0   ;;  %v432_v6 = vld [vmem:[%s1778_s1 + $0x10] sm:$0xff] (!%p1081_p4)  ;;  %v421_v28 = vlaneseq (!%p1081_p4) }
   0xf   : > { %s1489_s16 = sshll.u32 %s393_s15, 3  ;;  %s1092_s17 = sshll.u32 %s393_s15, 10  ;;  %v430_v1 = vld [vmem:[%s1778_s1] sm:$0xff] (!%p1081_p4)  ;;  %1389 = vset.pattern.permute.xlu0 (!%p1081_p4), %v1414_v3  ;;  %1197 = vmatprep.subr.bf16.mxu0 (!%p1081_p4), %v1415_v4  ;;  %v433_v7 = vld [vmem:[%s1778_s1 + $0x18] sm:$0xff] (!%p1081_p4)  ;;  %vm1416_vm0 = vmmov (!%p1081_p4), 0   ;;  %v1417_v8 = vmov (!%p1081_p4), 0.0  }
  0x10   : > { %s399_s23 = scalar_lea.vmem %s1780_s3, %s1489_s16  ;;  %s1502_s26 = scalar_lea.vmem %s1781_s4, %s1092_s17  ;;  %v1198_v5 = vpack.c.bf16 (!%p1081_p4), %v431_v2, %v430_v1  ;;  %425 = vperm.xlu0 (!%p1081_p4), %1389, %v423_v0   ;;  %1159 = vmatprep.mubr.msk.f32.mxu0 (!%p1081_p4), %vm1416_vm0, %v1417_v8  ;;  %v1201_v9 = vpack.c.bf16 (!%p1081_p4), %v433_v7, %v432_v6  ;;  %v434_v10 = vld [vmem:[%s1778_s1 + $0x20] sm:$0xff] (!%p1081_p4)  ;;  %v435_v11 = vld [vmem:[%s1778_s1 + $0x28] sm:$0xff] (!%p1081_p4)  ;;  %v436_v13 = vld [vmem:[%s1778_s1 + $0x30] sm:$0xff] (!%p1081_p4)  ;;  %v422_v29 = vand.u32 (!%p1081_p4), 127, %v421_v28  ;;  %v1418_v31 = vmov (!%p1081_p4), 1.0  }
  0x11   : > { %s1078_s27 = sshll.u32 %s393_s15, 2  ;;  %s412_s18 = scalar_lea.vmem %s1785_s8, %s1489_s16  ;;  %v1204_v12 = vpack.c.bf16 (!%p1081_p4), %v435_v11, %v434_v10  ;;  %v437_v14 = vld [vmem:[%s1778_s1 + $0x38] sm:$0xff] (!%p1081_p4)  ;;  %v438_v16 = vld [vmem:[%s1778_s1 + $0x40] sm:$0xff] (!%p1081_p4)  ;;  %v439_v17 = vld [vmem:[%s1778_s1 + $0x48] sm:$0xff] (!%p1081_p4) }
  0x12   : > { %s1507_s30 = scalar_lea.vmem %s1782_s5, %s1078_s27  ;;  %s416_s21 = scalar_lea.vmem %s1786_s9, %s1489_s16  ;;  %1199 = vmatpush3.bf16.msra.mxu0 (!%p1081_p4), %v1198_v5  ;;  %v1207_v15 = vpack.c.bf16 (!%p1081_p4), %v437_v14, %v436_v13  ;;  %v1210_v18 = vpack.c.bf16 (!%p1081_p4), %v439_v17, %v438_v16  ;;  %v440_v19 = vld [vmem:[%s1778_s1 + $0x50] sm:$0xff] (!%p1081_p4)  ;;  %v441_v20 = vld [vmem:[%s1778_s1 + $0x58] sm:$0xff] (!%p1081_p4)  ;;  %v442_v22 = vld [vmem:[%s1778_s1 + $0x60] sm:$0xff] (!%p1081_p4) }
  0x13   : > { %1200 = vmatprep.subr.bf16.mxu0 (!%p1081_p4), %v1415_v4  ;;  %v1213_v21 = vpack.c.bf16 (!%p1081_p4), %v441_v20, %v440_v19  ;;  %v443_v23 = vld [vmem:[%s1778_s1 + $0x68] sm:$0xff] (!%p1081_p4)  ;;  %v444_v25 = vld [vmem:[%s1778_s1 + $0x70] sm:$0xff] (!%p1081_p4)  ;;  %v445_v26 = vld [vmem:[%s1778_s1 + $0x78] sm:$0xff] (!%p1081_p4) }
  0x14   : > { %v1216_v24 = vpack.c.bf16 (!%p1081_p4), %v443_v23, %v442_v22  ;;  %v1219_v27 = vpack.c.bf16 (!%p1081_p4), %v445_v26, %v444_v25 }
  0x16   : > { %1202 = vmatpush3.bf16.msra.mxu0 %v1201_v9 }
  0x17   : > { %1203 = vmatprep.subr.bf16.mxu0 %v1415_v4 }
  0x1a   : > { %1205 = vmatpush3.bf16.msra.mxu0 %v1204_v12 }
  0x1b   : > { %1206 = vmatprep.subr.bf16.mxu0 %v1415_v4 }
  0x1e   : > { %1208 = vmatpush3.bf16.msra.mxu0 %v1207_v15 }
  0x1f   : > { %1209 = vmatprep.subr.bf16.mxu0 %v1415_v4 }
  0x22   : > { %1211 = vmatpush3.bf16.msra.mxu0 %v1210_v18 }
  0x23   : > { %1212 = vmatprep.subr.bf16.mxu0 %v1415_v4 }
  0x26   : > { %1214 = vmatpush3.bf16.msra.mxu0 %v1213_v21 }
  0x27   : > { %1215 = vmatprep.subr.bf16.mxu0 %v1415_v4 }
  0x2a   : > { %1217 = vmatpush3.bf16.msra.mxu0 %v1216_v24 }
  0x2b   : > { %1218 = vmatprep.subr.bf16.mxu0 %v1415_v4 }
  0x2e   : > { %1220 = vmatpush3.bf16.msra.mxu0 %v1219_v27 }
  0x8f   : > { %v426_v30 = vpop.permute.xlu0 %425 }
  0x90   : > { %vm427_vm1 = vcmp.eq.s32.totalorder %v422_v29, %v426_v30 }
  0x91   : > { %1160 = vmatmul.mubr.msk.f32.vlgmr.msra.gmra.mrb[0].mxu0 %vm427_vm1, %v1418_v31 }
 0x164   : > { %v512_v32 = vpop.f32.mrb[0].mxu0 }
 0x165   : > { %516 = vst [vmem:[#allocation2] sm:$0xff] %v512_v32  ;;  %v1161_v33 = vpop.f32.mrb[1].mxu0 }
 0x166 PF: > { %v522_v34 = vld [vmem:[%s1502_s26 + $0x8] sm:$0xff]  ;;  %v521_v36 = vld [vmem:[%s1502_s26] sm:$0xff]  ;;  %v524_v52 = vld [vmem:[%s1502_s26 + $0x18] sm:$0xff]  ;;  %s1788_s22 = scalar_lea.vmem %s1779_s2, %s1489_s16  ;;  %p1087_p5 = scmp.ge.s32.totalorder %s1483_s14, 1 }
 0x167   : > { %v526_v35 = vld [vmem:[%s1502_s26 + $0x28] sm:$0xff]  ;;  %v525_v38 = vld [vmem:[%s1502_s26 + $0x20] sm:$0xff]  ;;  %v528_v53 = vld [vmem:[%s1502_s26 + $0x38] sm:$0xff] }
 0x168   : > { %v1221_v37 = vpack.c.bf16 %v526_v35, %v522_v34  ;;  %v530_v39 = vld [vmem:[%s1502_s26 + $0x48] sm:$0xff]  ;;  %v1223_v41 = vpack.c.bf16 %v525_v38, %v521_v36  ;;  %v529_v43 = vld [vmem:[%s1502_s26 + $0x40] sm:$0xff]  ;;  %v1285_v55 = vpack.c.bf16 %v528_v53, %v524_v52  ;;  %v523_v56 = vld [vmem:[%s1502_s26 + $0x10] sm:$0xff] }
 0x169   : > { %v534_v40 = vld [vmem:[%s1502_s26 + $0x68] sm:$0xff]  ;;  %v533_v44 = vld [vmem:[%s1502_s26 + $0x60] sm:$0xff]  ;;  %v527_v57 = vld [vmem:[%s1502_s26 + $0x30] sm:$0xff] }
 0x16a   : > { %v1225_v42 = vpack.c.bf16 %v534_v40, %v530_v39  ;;  %v538_v45 = vld [vmem:[%s1502_s26 + $0x88] sm:$0xff]  ;;  %1222 = vmatprep.subr.bf16.mxu0 %v1221_v37  ;;  %v1227_v47 = vpack.c.bf16 %v533_v44, %v529_v43  ;;  %v537_v48 = vld [vmem:[%s1502_s26 + $0x80] sm:$0xff]  ;;  %v1287_v58 = vpack.c.bf16 %v527_v57, %v523_v56  ;;  %1286 = vmatprep.subr.bf16.mxu1 %v1285_v55  ;;  %v532_v60 = vld [vmem:[%s1502_s26 + $0x58] sm:$0xff] }
 0x16b   : > { %v542_v46 = vld [vmem:[%s1502_s26 + $0xa8] sm:$0xff]  ;;  %1224 = vmatpush1.bf16.msra.mxu0 %v1223_v41  ;;  %v541_v49 = vld [vmem:[%s1502_s26 + $0xa0] sm:$0xff]  ;;  %v536_v61 = vld [vmem:[%s1502_s26 + $0x78] sm:$0xff] }
 0x16c   : > { %1226 = vmatprep.subr.bf16.mxu0 %v1225_v42  ;;  %v1229_v50 = vpack.c.bf16 %v542_v46, %v538_v45  ;;  %v546_v51 = vld [vmem:[%s1502_s26 + $0xc8] sm:$0xff]  ;;  %v1231_v59 = vpack.c.bf16 %v541_v49, %v537_v48  ;;  %v531_v62 = vld [vmem:[%s1502_s26 + $0x50] sm:$0xff]  ;;  %v545_v0 = vld [vmem:[%s1502_s26 + $0xc0] sm:$0xff]  ;;  %1288 = vmatpush1.bf16.msra.mxu1 %v1287_v58  ;;  %v1289_v2 = vpack.c.bf16 %v536_v61, %v532_v60 }
 0x16d   : > { %v550_v54 = vld [vmem:[%s1502_s26 + $0xe8] sm:$0xff]  ;;  %v549_v1 = vld [vmem:[%s1502_s26 + $0xe0] sm:$0xff]  ;;  %v535_v3 = vld [vmem:[%s1502_s26 + $0x70] sm:$0xff] }
 0x16e   : > { %v1233_v63 = vpack.c.bf16 %v550_v54, %v546_v51  ;;  %v554_v4 = vld [vmem:[%s1502_s26 + $0x108] sm:$0xff]  ;;  %v1291_v6 = vpack.c.bf16 %v535_v3, %v531_v62  ;;  %v540_v7 = vld [vmem:[%s1502_s26 + $0x98] sm:$0xff]  ;;  %1290 = vmatprep.subr.bf16.mxu1 %v1289_v2  ;;  %v539_v9 = vld [vmem:[%s1502_s26 + $0x90] sm:$0xff]  ;;  %v1235_v11 = vpack.c.bf16 %v549_v1, %v545_v0 }
 0x16f   : > { %1228 = vmatpush1.bf16.msra.mxu0 %v1227_v47  ;;  %v558_v5 = vld [vmem:[%s1502_s26 + $0x128] sm:$0xff]  ;;  %v544_v8 = vld [vmem:[%s1502_s26 + $0xb8] sm:$0xff]  ;;  %v543_v10 = vld [vmem:[%s1502_s26 + $0xb0] sm:$0xff] }
 0x170   : > { %1230 = vmatprep.subr.bf16.mxu0 %v1229_v50  ;;  %v553_v12 = vld [vmem:[%s1502_s26 + $0x100] sm:$0xff]  ;;  %v1293_v14 = vpack.c.bf16 %v544_v8, %v540_v7  ;;  %v1237_v15 = vpack.c.bf16 %v558_v5, %v554_v4  ;;  %1292 = vmatpush1.bf16.msra.mxu1 %v1291_v6  ;;  %v562_v16 = vld [vmem:[%s1502_s26 + $0x148] sm:$0xff]  ;;  %v1295_v17 = vpack.c.bf16 %v543_v10, %v539_v9  ;;  %v548_v18 = vld [vmem:[%s1502_s26 + $0xd8] sm:$0xff] }
 0x171   : > { %v557_v13 = vld [vmem:[%s1502_s26 + $0x120] sm:$0xff]  ;;  %v552_v19 = vld [vmem:[%s1502_s26 + $0xf8] sm:$0xff]  ;;  %v566_v20 = vld [vmem:[%s1502_s26 + $0x168] sm:$0xff] }
 0x172   : > { %1294 = vmatprep.subr.bf16.mxu1 %v1293_v14  ;;  %v1297_v21 = vpack.c.bf16 %v552_v19, %v548_v18  ;;  %v547_v22 = vld [vmem:[%s1502_s26 + $0xd0] sm:$0xff]  ;;  %v1239_v24 = vpack.c.bf16 %v557_v13, %v553_v12  ;;  %v556_v25 = vld [vmem:[%s1502_s26 + $0x118] sm:$0xff]  ;;  %v1241_v27 = vpack.c.bf16 %v566_v20, %v562_v16  ;;  %v561_v28 = vld [vmem:[%s1502_s26 + $0x140] sm:$0xff] }
 0x173   : > { %1232 = vmatpush1.bf16.msra.mxu0 %v1231_v59  ;;  %v551_v23 = vld [vmem:[%s1502_s26 + $0xf0] sm:$0xff]  ;;  %v560_v26 = vld [vmem:[%s1502_s26 + $0x138] sm:$0xff]  ;;  %v565_v29 = vld [vmem:[%s1502_s26 + $0x160] sm:$0xff] }
 0x174   : > { %1234 = vmatprep.subr.bf16.mxu0 %v1233_v63  ;;  %1296 = vmatpush1.bf16.msra.mxu1 %v1295_v17  ;;  %v570_v30 = vld [vmem:[%s1502_s26 + $0x188] sm:$0xff]  ;;  %v1299_v31 = vpack.c.bf16 %v551_v23, %v547_v22  ;;  %v1301_v33 = vpack.c.bf16 %v560_v26, %v556_v25  ;;  %v555_v34 = vld [vmem:[%s1502_s26 + $0x110] sm:$0xff]  ;;  %v564_v36 = vld [vmem:[%s1502_s26 + $0x158] sm:$0xff]  ;;  %v1243_v38 = vpack.c.bf16 %v565_v29, %v561_v28 }
 0x175   : > { %v574_v32 = vld [vmem:[%s1502_s26 + $0x1a8] sm:$0xff]  ;;  %1298 = vmatprep.subr.bf16.mxu1 %v1297_v21  ;;  %v559_v35 = vld [vmem:[%s1502_s26 + $0x130] sm:$0xff]  ;;  %v568_v37 = vld [vmem:[%s1502_s26 + $0x178] sm:$0xff] }
 0x176   : > { %v1245_v39 = vpack.c.bf16 %v574_v32, %v570_v30  ;;  %v569_v40 = vld [vmem:[%s1502_s26 + $0x180] sm:$0xff]  ;;  %v578_v42 = vld [vmem:[%s1502_s26 + $0x1c8] sm:$0xff]  ;;  %v1303_v43 = vpack.c.bf16 %v559_v35, %v555_v34  ;;  %v1305_v45 = vpack.c.bf16 %v568_v37, %v564_v36  ;;  %v563_v46 = vld [vmem:[%s1502_s26 + $0x150] sm:$0xff] }
 0x177   : > { %1236 = vmatpush1.bf16.msra.mxu0 %v1235_v11  ;;  %v573_v41 = vld [vmem:[%s1502_s26 + $0x1a0] sm:$0xff]  ;;  %v582_v44 = vld [vmem:[%s1502_s26 + $0x1e8] sm:$0xff]  ;;  %v567_v47 = vld [vmem:[%s1502_s26 + $0x170] sm:$0xff] }
 0x178   : > { %1238 = vmatprep.subr.bf16.mxu0 %v1237_v15  ;;  %1300 = vmatpush1.bf16.msra.mxu1 %v1299_v31  ;;  %v572_v48 = vld [vmem:[%s1502_s26 + $0x198] sm:$0xff]  ;;  %v1247_v50 = vpack.c.bf16 %v573_v41, %v569_v40  ;;  %v1249_v51 = vpack.c.bf16 %v582_v44, %v578_v42  ;;  %v577_v52 = vld [vmem:[%s1502_s26 + $0x1c0] sm:$0xff]  ;;  %v586_v54 = vld [vmem:[%s1502_s26 + $0x208] sm:$0xff]  ;;  %v1307_v55 = vpack.c.bf16 %v567_v47, %v563_v46 }
 0x179   : > { %1302 = vmatprep.subr.bf16.mxu1 %v1301_v33  ;;  %v576_v49 = vld [vmem:[%s1502_s26 + $0x1b8] sm:$0xff]  ;;  %v581_v53 = vld [vmem:[%s1502_s26 + $0x1e0] sm:$0xff]  ;;  %v590_v56 = vld [vmem:[%s1502_s26 + $0x228] sm:$0xff] }
 0x17a   : > { %v1309_v57 = vpack.c.bf16 %v576_v49, %v572_v48  ;;  %v571_v58 = vld [vmem:[%s1502_s26 + $0x190] sm:$0xff]  ;;  %v580_v60 = vld [vmem:[%s1502_s26 + $0x1d8] sm:$0xff]  ;;  %v1251_v62 = vpack.c.bf16 %v581_v53, %v577_v52  ;;  %v1253_v63 = vpack.c.bf16 %v590_v56, %v586_v54  ;;  %v585_v0 = vld [vmem:[%s1502_s26 + $0x200] sm:$0xff] }
 0x17b   : > { %1240 = vmatpush1.bf16.msra.mxu0 %v1239_v24  ;;  %v575_v59 = vld [vmem:[%s1502_s26 + $0x1b0] sm:$0xff]  ;;  %v584_v61 = vld [vmem:[%s1502_s26 + $0x1f8] sm:$0xff]  ;;  %v589_v1 = vld [vmem:[%s1502_s26 + $0x220] sm:$0xff] }
 0x17c   : > { %1242 = vmatprep.subr.bf16.mxu0 %v1241_v27  ;;  %1304 = vmatpush1.bf16.msra.mxu1 %v1303_v43  ;;  %v594_v2 = vld [vmem:[%s1502_s26 + $0x248] sm:$0xff]  ;;  %v1311_v3 = vpack.c.bf16 %v575_v59, %v571_v58  ;;  %v1313_v5 = vpack.c.bf16 %v584_v61, %v580_v60  ;;  %v579_v6 = vld [vmem:[%s1502_s26 + $0x1d0] sm:$0xff]  ;;  %v588_v8 = vld [vmem:[%s1502_s26 + $0x218] sm:$0xff]  ;;  %v1255_v10 = vpack.c.bf16 %v589_v1, %v585_v0 }
 0x17d   : > { %1306 = vmatprep.subr.bf16.mxu1 %v1305_v45  ;;  %v598_v4 = vld [vmem:[%s1502_s26 + $0x268] sm:$0xff]  ;;  %v583_v7 = vld [vmem:[%s1502_s26 + $0x1f0] sm:$0xff]  ;;  %v592_v9 = vld [vmem:[%s1502_s26 + $0x238] sm:$0xff] }
 0x17e   : > { %v1257_v11 = vpack.c.bf16 %v598_v4, %v594_v2  ;;  %v593_v12 = vld [vmem:[%s1502_s26 + $0x240] sm:$0xff]  ;;  %v602_v14 = vld [vmem:[%s1502_s26 + $0x288] sm:$0xff]  ;;  %v1315_v15 = vpack.c.bf16 %v583_v7, %v579_v6  ;;  %v1317_v17 = vpack.c.bf16 %v592_v9, %v588_v8  ;;  %v587_v18 = vld [vmem:[%s1502_s26 + $0x210] sm:$0xff] }
 0x17f   : > { %1244 = vmatpush1.bf16.msra.mxu0 %v1243_v38  ;;  %v597_v13 = vld [vmem:[%s1502_s26 + $0x260] sm:$0xff]  ;;  %v606_v16 = vld [vmem:[%s1502_s26 + $0x2a8] sm:$0xff]  ;;  %v591_v19 = vld [vmem:[%s1502_s26 + $0x230] sm:$0xff] }
 0x180   : > { %1246 = vmatprep.subr.bf16.mxu0 %v1245_v39  ;;  %1308 = vmatpush1.bf16.msra.mxu1 %v1307_v55  ;;  %v596_v20 = vld [vmem:[%s1502_s26 + $0x258] sm:$0xff]  ;;  %v1259_v22 = vpack.c.bf16 %v597_v13, %v593_v12  ;;  %v601_v23 = vld [vmem:[%s1502_s26 + $0x280] sm:$0xff]  ;;  %v1261_v24 = vpack.c.bf16 %v606_v16, %v602_v14  ;;  %v610_v26 = vld [vmem:[%s1502_s26 + $0x2c8] sm:$0xff]  ;;  %v1319_v28 = vpack.c.bf16 %v591_v19, %v587_v18 }
 0x181   : > { %1310 = vmatprep.subr.bf16.mxu1 %v1309_v57  ;;  %v600_v21 = vld [vmem:[%s1502_s26 + $0x278] sm:$0xff]  ;;  %v605_v25 = vld [vmem:[%s1502_s26 + $0x2a0] sm:$0xff]  ;;  %v614_v27 = vld [vmem:[%s1502_s26 + $0x2e8] sm:$0xff] }
 0x182   : > { %v1321_v29 = vpack.c.bf16 %v600_v21, %v596_v20  ;;  %v595_v30 = vld [vmem:[%s1502_s26 + $0x250] sm:$0xff]  ;;  %v517_v32 = vld [vmem:[%s1788_s22] sm:$0xff]  ;;  %v604_v33 = vld [vmem:[%s1502_s26 + $0x298] sm:$0xff]  ;;  %v1263_v35 = vpack.c.bf16 %v605_v25, %v601_v23  ;;  %v1265_v36 = vpack.c.bf16 %v614_v27, %v610_v26 }
 0x183   : > { %1248 = vmatpush1.bf16.msra.mxu0 %v1247_v50  ;;  %v599_v31 = vld [vmem:[%s1502_s26 + $0x270] sm:$0xff]  ;;  %v608_v34 = vld [vmem:[%s1502_s26 + $0x2b8] sm:$0xff]  ;;  %735 = vmatprep.mubr.f32.mxu0 %v517_v32  ;;  %v609_v37 = vld [vmem:[%s1502_s26 + $0x2c0] sm:$0xff] }
 0x184   : > { %1250 = vmatprep.subr.bf16.mxu0 %v1249_v51  ;;  %1312 = vmatpush1.bf16.msra.mxu1 %v1311_v3  ;;  %v613_v38 = vld [vmem:[%s1502_s26 + $0x2e0] sm:$0xff]  ;;  %v618_v39 = vld [vmem:[%s1502_s26 + $0x308] sm:$0xff]  ;;  %v1323_v40 = vpack.c.bf16 %v599_v31, %v595_v30  ;;  %v1325_v42 = vpack.c.bf16 %v608_v34, %v604_v33  ;;  %v603_v43 = vld [vmem:[%s1502_s26 + $0x290] sm:$0xff] }
 0x185   : > { %1314 = vmatprep.subr.bf16.mxu1 %v1313_v5  ;;  %806 = vmatprep.mubr.f32.mxu1 %v517_v32  ;;  %v622_v41 = vld [vmem:[%s1502_s26 + $0x328] sm:$0xff]  ;;  %v607_v44 = vld [vmem:[%s1502_s26 + $0x2b0] sm:$0xff]  ;;  %v612_v45 = vld [vmem:[%s1502_s26 + $0x2d8] sm:$0xff]  ;;  %v1267_v47 = vpack.c.bf16 %v613_v38, %v609_v37 }
 0x186   : > { %v616_v46 = vld [vmem:[%s1502_s26 + $0x2f8] sm:$0xff]  ;;  %v1269_v48 = vpack.c.bf16 %v622_v41, %v618_v39  ;;  %v617_v49 = vld [vmem:[%s1502_s26 + $0x300] sm:$0xff]  ;;  %v626_v51 = vld [vmem:[%s1502_s26 + $0x348] sm:$0xff]  ;;  %v1327_v52 = vpack.c.bf16 %v607_v44, %v603_v43 }
 0x187   : > { %1252 = vmatpush1.bf16.msra.mxu0 %v1251_v62  ;;  %v621_v50 = vld [vmem:[%s1502_s26 + $0x320] sm:$0xff]  ;;  %v630_v53 = vld [vmem:[%s1502_s26 + $0x368] sm:$0xff]  ;;  %v1329_v54 = vpack.c.bf16 %v616_v46, %v612_v45  ;;  %v611_v55 = vld [vmem:[%s1502_s26 + $0x2d0] sm:$0xff] }
 0x188   : > { %1254 = vmatprep.subr.bf16.mxu0 %v1253_v63  ;;  %1316 = vmatpush1.bf16.msra.mxu1 %v1315_v15  ;;  %v615_v56 = vld [vmem:[%s1502_s26 + $0x2f0] sm:$0xff]  ;;  %v620_v57 = vld [vmem:[%s1502_s26 + $0x318] sm:$0xff]  ;;  %v1271_v59 = vpack.c.bf16 %v621_v50, %v617_v49  ;;  %v1273_v60 = vpack.c.bf16 %v630_v53, %v626_v51  ;;  %v625_v61 = vld [vmem:[%s1502_s26 + $0x340] sm:$0xff] }
 0x189   : > { %1318 = vmatprep.subr.bf16.mxu1 %v1317_v17  ;;  %v624_v58 = vld [vmem:[%s1502_s26 + $0x338] sm:$0xff]  ;;  %v629_v62 = vld [vmem:[%s1502_s26 + $0x360] sm:$0xff]  ;;  %v634_v63 = vld [vmem:[%s1502_s26 + $0x388] sm:$0xff]  ;;  %v1331_v0 = vpack.c.bf16 %v615_v56, %v611_v55 }
 0x18a   : > { %v638_v1 = vld [vmem:[%s1502_s26 + $0x3a8] sm:$0xff]  ;;  %v1333_v2 = vpack.c.bf16 %v624_v58, %v620_v57  ;;  %v619_v3 = vld [vmem:[%s1502_s26 + $0x310] sm:$0xff]  ;;  %v628_v5 = vld [vmem:[%s1502_s26 + $0x358] sm:$0xff]  ;;  %v1275_v7 = vpack.c.bf16 %v629_v62, %v625_v61 }
 0x18b   : > { %1256 = vmatpush1.bf16.msra.mxu0 %v1255_v10  ;;  %v623_v4 = vld [vmem:[%s1502_s26 + $0x330] sm:$0xff]  ;;  %v632_v6 = vld [vmem:[%s1502_s26 + $0x378] sm:$0xff]  ;;  %v1277_v8 = vpack.c.bf16 %v638_v1, %v634_v63  ;;  %v633_v9 = vld [vmem:[%s1502_s26 + $0x380] sm:$0xff] }
 0x18c   : > { %1258 = vmatprep.subr.bf16.mxu0 %v1257_v11  ;;  %1320 = vmatpush1.bf16.msra.mxu1 %v1319_v28  ;;  %v637_v10 = vld [vmem:[%s1502_s26 + $0x3a0] sm:$0xff]  ;;  %v642_v11 = vld [vmem:[%s1502_s26 + $0x3c8] sm:$0xff]  ;;  %v1335_v12 = vpack.c.bf16 %v623_v4, %v619_v3  ;;  %v1337_v14 = vpack.c.bf16 %v632_v6, %v628_v5  ;;  %v627_v15 = vld [vmem:[%s1502_s26 + $0x350] sm:$0xff] }
 0x18d   : > { %1322 = vmatprep.subr.bf16.mxu1 %v1321_v29  ;;  %v646_v13 = vld [vmem:[%s1502_s26 + $0x3e8] sm:$0xff]  ;;  %v631_v16 = vld [vmem:[%s1502_s26 + $0x370] sm:$0xff]  ;;  %v636_v17 = vld [vmem:[%s1502_s26 + $0x398] sm:$0xff]  ;;  %v1279_v19 = vpack.c.bf16 %v637_v10, %v633_v9 }
 0x18e   : > { %v640_v18 = vld [vmem:[%s1502_s26 + $0x3b8] sm:$0xff]  ;;  %v1281_v20 = vpack.c.bf16 %v646_v13, %v642_v11  ;;  %v641_v21 = vld [vmem:[%s1502_s26 + $0x3c0] sm:$0xff]  ;;  %v1339_v23 = vpack.c.bf16 %v631_v16, %v627_v15  ;;  %v635_v25 = vld [vmem:[%s1502_s26 + $0x390] sm:$0xff] }
 0x18f   : > { %1260 = vmatpush1.bf16.msra.mxu0 %v1259_v22  ;;  %v645_v22 = vld [vmem:[%s1502_s26 + $0x3e0] sm:$0xff]  ;;  %v639_v26 = vld [vmem:[%s1502_s26 + $0x3b0] sm:$0xff]  ;;  %v644_v27 = vld [vmem:[%s1502_s26 + $0x3d8] sm:$0xff] }
 0x190   : > { %1262 = vmatprep.subr.bf16.mxu0 %v1261_v24  ;;  %1324 = vmatpush1.bf16.msra.mxu1 %v1323_v40  ;;  %v1341_v24 = vpack.c.bf16 %v640_v18, %v636_v17  ;;  %v648_v28 = vld [vmem:[%s1502_s26 + $0x3f8] sm:$0xff]  ;;  %v1283_v29 = vpack.c.bf16 %v645_v22, %v641_v21  ;;  %v1343_v30 = vpack.c.bf16 %v639_v26, %v635_v25  ;;  %v643_v32 = vld [vmem:[%s1502_s26 + $0x3d0] sm:$0xff]  ;;  %v519_v34 = vld [vmem:[#allocation2] sm:$0xff] }
 0x191   : > { %1326 = vmatprep.subr.bf16.mxu1 %v1325_v42  ;;  %v1345_v31 = vpack.c.bf16 %v648_v28, %v644_v27  ;;  %v647_v33 = vld [vmem:[%s1502_s26 + $0x3f0] sm:$0xff]  ;;  %v649_v39 = vld [vmem:[%s1507_s30] sm:$0xf] }
 0x193   : > { %1264 = vmatpush1.bf16.msra.mxu0 %v1263_v35  ;;  %v1347_v35 = vpack.c.bf16 %v647_v33, %v643_v32 }
 0x194   : > { %1266 = vmatprep.subr.bf16.mxu0 %v1265_v36  ;;  %1328 = vmatpush1.bf16.msra.mxu1 %v1327_v52  ;;  %v651_v36 = vlaneseq }
 0x195   : > { %1330 = vmatprep.subr.bf16.mxu1 %v1329_v54 }
 0x196   : > { %v652_v37 = vshrl.u32 %v651_v36, 7 }
 0x197   : > { %1268 = vmatpush1.bf16.msra.mxu0 %v1267_v47 }
 0x198   : > { %1270 = vmatprep.subr.bf16.mxu0 %v1269_v48  ;;  %1332 = vmatpush1.bf16.msra.mxu1 %v1331_v0  ;;  %v653_v38 = vsub.s32 0, %v652_v37  ;;  %v657_v40 = vsub.s32 1, %v652_v37  ;;  %v665_v43 = vsub.s32 3, %v652_v37  ;;  %v661_v51 = vsub.s32 2, %v652_v37  ;;  %v832_v0 = vld [vmem:[%s399_s23] sm:$0xff] }
 0x199   : > { %1334 = vmatprep.subr.bf16.mxu1 %v1333_v2 }
 0x19a   : > { %v654_v41 = vrot.slane %v649_v39, %v653_v38  ;;  %v658_v42 = vrot.slane %v649_v39, %v657_v40  ;;  %v666_v49 = vrot.slane %v649_v39, %v665_v43  ;;  %v662_v55 = vrot.slane %v649_v39, %v661_v51 }
 0x19b   : > { %1272 = vmatpush1.bf16.msra.mxu0 %v1271_v59 }
 0x19c   : > { %1274 = vmatprep.subr.bf16.mxu0 %v1273_v60  ;;  %1336 = vmatpush1.bf16.msra.mxu1 %v1335_v12 }
 0x19d   : > { %1338 = vmatprep.subr.bf16.mxu1 %v1337_v14 }
 0x19f   : > { %1276 = vmatpush1.bf16.msra.mxu0 %v1275_v7 }
 0x1a0   : > { %1278 = vmatprep.subr.bf16.mxu0 %v1277_v8  ;;  %1340 = vmatpush1.bf16.msra.mxu1 %v1339_v23 }
 0x1a1   : > { %1342 = vmatprep.subr.bf16.mxu1 %v1341_v24 }
 0x1a3   : > { %1280 = vmatpush1.bf16.msra.mxu0 %v1279_v19 }
 0x1a4   : > { %1282 = vmatprep.subr.bf16.mxu0 %v1281_v20  ;;  %1344 = vmatpush1.bf16.msra.mxu1 %v1343_v30 }
 0x1a5   : > { %1346 = vmatprep.subr.bf16.mxu1 %v1345_v31 }
 0x1a7   : > { %1284 = vmatpush1.bf16.msra.mxu0 %v1283_v29 }
 0x1a8   : > { %1348 = vmatpush1.bf16.msra.mxu1 %v1347_v35 }
 0x1aa   : > { %736 = vmatmul.mubr.f32.vlgmr.msra.gmra.mrb[0].mxu0 %v519_v34 }
 0x1ab   : > { %807 = vmatmul.mubr.f32.vlgmr.msra.gmra.mrb[0].mxu1 %v519_v34 }
 0x27d   : > { %v737_v44 = vpop.f32.mrb[0].mxu0 }
 0x27e   : > { %v738_v45 = vadd.f32 %v737_v44, %v654_v41  ;;  %v739_v46 = vpop.f32.mrb[1].mxu0  ;;  %v808_v52 = vpop.f32.mrb[0].mxu1 }
 0x27f   : > { %v740_v47 = vadd.f32 %v739_v46, %v658_v42  ;;  %v810_v53 = vpop.f32.mrb[1].mxu1  ;;  %v809_v57 = vadd.f32 %v808_v52, %v662_v55 }
 0x280   : > { %v1084_v48 = vmul.f32 -1.442695, %v738_v45  ;;  %v811_v54 = vadd.f32 %v810_v53, %v666_v49 }
 0x281   : > { %v1085_v50 = vmul.f32 -1.442695, %v740_v47 }
 0x282   : > { %1390 = vpow2.f32 %v1084_v48  ;;  %v1086_v56 = vmul.f32 -1.442695, %v811_v54 }
 0x283   : > { %1392 = vpow2.f32 %v1085_v50 }
 0x284   : > { %1394 = vpow2.f32 %v1086_v56 }
 0x285   : > { %1396 = vtanh.f32 %v809_v57 }
 0x28c   : > { %v1391_v58 = vpop.eup %1390 }
 0x28d   : > { %v1393_v59 = vpop.eup %1392  ;;  %v816_v60 = vadd.f32 1.0, %v1391_v58 }
 0x28e   : > { %v822_v61 = vadd.f32 1.0, %v1393_v59  ;;  %v1395_v62 = vpop.eup %1394 }
 0x28f   : > { %1398 = vrcp.f32 %v816_v60  ;;  %v1397_v63 = vpop.eup %1396  ;;  %v829_v2 = vadd.f32 1.0, %v1395_v62 }
 0x290   : > { %1400 = vrcp.f32 %v822_v61 }
 0x291   : > { %1402 = vrcp.f32 %v829_v2 }
 0x299   : > { %v1399_v1 = vpop.eup %1398 }
 0x29a   : > { %v1401_v3 = vpop.eup %1400  ;;  %v834_v4 = vmul.f32 %v1399_v1, %v1397_v63 }
 0x29b   : > { %v833_v5 = vmul.f32 %v1401_v3, %v832_v0  ;;  %v1403_v7 = vpop.eup %1402 }
 0x29d   : > { %v835_v6 = vadd.f32 %v834_v4, %v833_v5 }
 0x29f   : > { %1404 = vtanh.f32 %v835_v6  ;;  %839 = vst [vmem:[%s416_s21] sm:$0xff] %v835_v6 }
 0x2a6   : > { %843 = sbr.rel (%p1087_p5) target bundleno = 685 (0x2ad), region = 60 }
 0x2a9   : > { %v1405_v8 = vpop.eup %1404 }
 0x2aa   : > { %v837_v9 = vmul.f32 %v1405_v8, %v1403_v7 }
 0x2ac   : > { %838 = vst [vmem:[%s412_s18] sm:$0xff] %v837_v9  ;;  %844 = vst [vmem:[#allocation2] sm:$0xff] (!%p1087_p5), %v837_v9 }
 0x2ad PF: > { %p1088_p6 = scmp.ne.s32.totalorder %s1483_s14, 1 }
 0x2ae   : > { %v849_v10 = vld [vmem:[%s1783_s6] sm:$0xff] (!%p1088_p6)  ;;  %v850_v11 = vld [vmem:[%s1783_s6 + $0x8] sm:$0xff] (!%p1088_p6)  ;;  %v851_v12 = vld [vmem:[%s1783_s6 + $0x10] sm:$0xff] (!%p1088_p6)  ;;  %v1419_v13 = vmov (!%p1088_p6), 0.0|0.0   ;;  %vm1420_vm2 = vmmov (!%p1088_p6), 0   ;;  %v1421_v16 = vmov (!%p1088_p6), 0.0  }
 0x2af   : > { %848 = sbr.rel (%p1088_p6) target bundleno = 935 (0x3a7), region = 64  ;;  %1349 = vmatprep.subr.bf16.mxu0 (!%p1088_p6), %v1419_v13  ;;  %v1350_v14 = vpack.c.bf16 (!%p1088_p6), %v850_v11, %v849_v10  ;;  %v852_v15 = vld [vmem:[%s1783_s6 + $0x18] sm:$0xff] (!%p1088_p6)  ;;  %1194 = vmatprep.mubr.msk.f32.mxu0 (!%p1088_p6), %vm1420_vm2, %v1421_v16  ;;  %v853_v18 = vld [vmem:[%s1783_s6 + $0x20] sm:$0xff] (!%p1088_p6)  ;;  %v854_v19 = vld [vmem:[%s1783_s6 + $0x28] sm:$0xff] (!%p1088_p6) }
 0x2b0   : > { %v1353_v17 = vpack.c.bf16 (!%p1088_p6), %v852_v15, %v851_v12  ;;  %v1356_v20 = vpack.c.bf16 (!%p1088_p6), %v854_v19, %v853_v18  ;;  %v855_v21 = vld [vmem:[%s1783_s6 + $0x30] sm:$0xff] (!%p1088_p6)  ;;  %v856_v22 = vld [vmem:[%s1783_s6 + $0x38] sm:$0xff] (!%p1088_p6)  ;;  %v857_v24 = vld [vmem:[%s1783_s6 + $0x40] sm:$0xff] (!%p1088_p6) }
 0x2b1   : > { %1351 = vmatpush3.bf16.msra.mxu0 (!%p1088_p6), %v1350_v14  ;;  %v1359_v23 = vpack.c.bf16 (!%p1088_p6), %v856_v22, %v855_v21  ;;  %v858_v25 = vld [vmem:[%s1783_s6 + $0x48] sm:$0xff] (!%p1088_p6)  ;;  %v859_v27 = vld [vmem:[%s1783_s6 + $0x50] sm:$0xff] (!%p1088_p6)  ;;  %v860_v28 = vld [vmem:[%s1783_s6 + $0x58] sm:$0xff] (!%p1088_p6) }
 0x2b2   : > { %1352 = vmatprep.subr.bf16.mxu0 (!%p1088_p6), %v1419_v13  ;;  %v1362_v26 = vpack.c.bf16 (!%p1088_p6), %v858_v25, %v857_v24  ;;  %v1365_v29 = vpack.c.bf16 (!%p1088_p6), %v860_v28, %v859_v27  ;;  %v861_v30 = vld [vmem:[%s1783_s6 + $0x60] sm:$0xff] (!%p1088_p6)  ;;  %v862_v31 = vld [vmem:[%s1783_s6 + $0x68] sm:$0xff] (!%p1088_p6)  ;;  %v863_v33 = vld [vmem:[%s1783_s6 + $0x70] sm:$0xff] (!%p1088_p6) }
 0x2b3   : > { %v1368_v32 = vpack.c.bf16 (!%p1088_p6), %v862_v31, %v861_v30  ;;  %v864_v34 = vld [vmem:[%s1783_s6 + $0x78] sm:$0xff] (!%p1088_p6)  ;;  %v1089_v36 = vld [vmem:[%s1784_s7] ss:$0 sm:$0xff] (!%p1088_p6) }
 0x2b4   : > { %v1371_v35 = vpack.c.bf16 (!%p1088_p6), %v864_v34, %v863_v33 }
 0x2b5   : > { %1354 = vmatpush3.bf16.msra.mxu0 (!%p1088_p6), %v1353_v17 }
 0x2b6   : > { %1355 = vmatprep.subr.bf16.mxu0 %v1419_v13 }
 0x2b9   : > { %1357 = vmatpush3.bf16.msra.mxu0 %v1356_v20 }
 0x2ba   : > { %1358 = vmatprep.subr.bf16.mxu0 %v1419_v13 }
 0x2bd   : > { %1360 = vmatpush3.bf16.msra.mxu0 %v1359_v23 }
 0x2be   : > { %1361 = vmatprep.subr.bf16.mxu0 %v1419_v13 }
 0x2c1   : > { %1363 = vmatpush3.bf16.msra.mxu0 %v1362_v26 }
 0x2c2   : > { %1364 = vmatprep.subr.bf16.mxu0 %v1419_v13 }
 0x2c5   : > { %1366 = vmatpush3.bf16.msra.mxu0 %v1365_v29 }
 0x2c6   : > { %1367 = vmatprep.subr.bf16.mxu0 %v1419_v13 }
 0x2c9   : > { %1369 = vmatpush3.bf16.msra.mxu0 %v1368_v32 }
 0x2ca   : > { %1370 = vmatprep.subr.bf16.mxu0 %v1419_v13 }
 0x2cd   : > { %1372 = vmatpush3.bf16.msra.mxu0 %v1371_v35 }
 0x2d0   : > { %1195 = vmatmul.mubr.f32.vlgmr.msra.gmra.mrb[0].mxu0 %v837_v9 }
 0x3a3   : > { %v938_v37 = vpop.f32.mrb[0].mxu0 }
 0x3a4   : > { %v939_v38 = vadd.f32 %v1089_v36, %v938_v37  ;;  %v1196_v39 = vpop.f32.mrb[1].mxu0 }
 0x3a6   : > { %942 = vst [vmem:[%s1787_s10] sm:$0xff] %v939_v38 }
 0x3a7 PF: > { %s21_s13 = sadd.s32 1, %s1412_s13  }
 0x3a8   : > { %p18_p7 = scmp.ge.s32.totalorder %s21_s13, 4  }
 0x3aa   :  { %20 = sbr.rel (!%p18_p7) target bundleno = 1 (0x1), region = 123 }

</bundles_post_ra>
